<compile_context>
chip_gen: v6e
topology: v6e:2x2x1
jax: 0.10.0
libtpu: 0.0.40
codegen_flags: <defaults>
</compile_context>

<pallas_src>
from collections import namedtuple

import jax
import jax.numpy as jnp
from jax import lax
from jax.experimental import pallas as pl
from jax.experimental.pallas import tpu as pltpu

# Problem sizes (small, consistent with a tiny visual model).
N, CIN, H, W = 2, 4, 16, 16
COUT, KH, KW = 8, 3, 3
HW = H * W                    # 256 -> lane axis (multiple of 128)
NC = N * CIN                  # 8   -> sublane axis
TAPS = KH * KW                # 9
K_DIM = TAPS * NC             # 72  -> contraction depth of the single matmul
LOG2W = W.bit_length() - 1    # W is a power of two
INV_HW = 1.0 / HW


def _conv_relu_pool_kernel(x_ref, w_ref, bias_ref, y_ref, pool_ref):
    """Single-step kernel (no grid): the whole problem lives in VMEM.

    x_ref    : (N*CIN, H*W)   flattened NCHW input (lane-dense)
    w_ref    : (N*COUT, 72)   block-diagonal im2col weights
    bias_ref : (N*COUT, 1)    bias column
    y_ref    : (N*COUT, H*W)  conv+ReLU output (reshapes to NCHW for free)
    pool_ref : (N*COUT, 1)    global-average-pooled features
    """
    xf = x_ref[...]                                          # load input once

    # Spatial coordinates of every lane position p = i*W + j.
    pos = lax.broadcasted_iota(jnp.int32, (NC, HW), 1)
    row = pos >> LOG2W
    col = pos & (W - 1)

    # Hoisted padding masks: 3 row-validity + 3 col-validity masks, computed
    # once.  Each tap below is then a single AND + select.
    row_ok = {dh: (row + dh >= 0) & (row + dh < H) for dh in (-1, 0, 1)}
    col_ok = {dw: (col + dw >= 0) & (col + dw < W) for dw in (-1, 0, 1)}

    # Build im2col as a value: one lane roll (XLU) + mask (VPU) per tap,
    # nine (8, 256) slabs concatenated along the sublane axis -> (72, 256).
    # The mask implements the conv's zero padding (wrap-around from roll is
    # always masked off).
    slabs = []
    for kh in range(KH):
        for kw in range(KW):
            dh, dw = kh - 1, kw - 1
            shift = dh * W + dw
            shifted = xf if shift == 0 else pltpu.roll(
                xf, shift=(-shift) % HW, axis=1)
            valid = row_ok[dh] & col_ok[dw]
            slabs.append(jnp.where(valid, shifted, 0.0))
    patches = jnp.concatenate(slabs, axis=0)                  # (72, 256)

    # One MXU matmul: (16, 72) @ (72, 256) -> (16, 256), lane-dense result.
    acc = jnp.dot(w_ref[...], patches,
                  preferred_element_type=jnp.float32,
                  precision=lax.Precision.HIGHEST)
    y = jnp.maximum(acc + bias_ref[...], 0.0)                 # bias + ReLU (VPU)
    y_ref[...] = y                                            # unmasked 256-wide stores
    pool_ref[...] = jnp.sum(y, axis=1, keepdims=True) * INV_HW  # GAP: XLU sum + VPU mul


def conv_relu_pool_pallas(x_flat, w_block, bias_col):
    """x_flat: (N*CIN, H*W) f32 -> (y (N*COUT, H*W), pooled (N*COUT, 1))."""
    vmem = pltpu.MemorySpace.VMEM
    return pl.pallas_call(
        _conv_relu_pool_kernel,
        out_shape=(
            jax.ShapeDtypeStruct((N * COUT, HW), jnp.float32),
            jax.ShapeDtypeStruct((N * COUT, 1), jnp.float32),
        ),
        in_specs=[pl.BlockSpec(memory_space=vmem)] * 3,
        out_specs=(pl.BlockSpec(memory_space=vmem),
                   pl.BlockSpec(memory_space=vmem)),
    )(x_flat, w_block, bias_col)


@jax.jit
def _forward(x_nchw, w_block, bias_col):
    """Whole forward path under one jit: reshape -> kernel -> reshapes."""
    x_flat = x_nchw.reshape(NC, HW)                 # free row-major reshape
    y2d, pooled = conv_relu_pool_pallas(x_flat, w_block, bias_col)
    logits = y2d.reshape(N, COUT, H, W)             # free: rows already NCHW-ordered
    features = pooled.reshape(N, COUT)
    return {"logits": logits, "features": features}


class ModelWrapperJAX:
    """JAX equivalent of the PyTorch ModelWrapper: wraps an inner model and
    converts dict -> sorted namedtuple, list -> tuple."""

    def __init__(self, model):
        self.model = model

    def __call__(self, input_x):
        data = self.model(input_x)
        if isinstance(data, dict):
            data_named_tuple = namedtuple('ModelEndpoints', sorted(data.keys()))
            data = data_named_tuple(**data)
        elif isinstance(data, list):
            data = tuple(data)
        return data


class TinyConvModel:
    """Inner model: Conv2d(4,8,3,pad=1) + ReLU + global-avg-pool, dict output.
    Takes / returns PyTorch-style NCHW tensors."""

    def __init__(self, key):
        kw_, kb_ = jax.random.split(key)
        # torch Conv2d default init: U(-1/sqrt(fan_in), 1/sqrt(fan_in))
        fan_in = CIN * KH * KW
        bound = 1.0 / (fan_in ** 0.5)
        self.w_oihw = jax.random.uniform(kw_, (COUT, CIN, KH, KW),
                                         jnp.float32, -bound, bound)
        self.bias = jax.random.uniform(kb_, (COUT,), jnp.float32, -bound, bound)

        # Pre-build (once) the block-diagonal im2col weight so the matmul
        # output rows are (n, cout)-ordered (= NCHW) and lane-dense:
        #   w_block[(n, o), t*N*CIN + m*CIN + c] = w[o, c, kh, kw] * (m == n)
        w_tc = jnp.transpose(self.w_oihw, (0, 2, 3, 1)).reshape(COUT, TAPS, CIN)
        blk = jnp.einsum('otc,nm->notmc', w_tc, jnp.eye(N, dtype=jnp.float32))
        self.w_block = blk.reshape(N * COUT, K_DIM)                     # (16, 72)
        self.bias_col = jnp.tile(self.bias[None, :], (N, 1)).reshape(N * COUT, 1)

    def __call__(self, x_nchw):
        return _forward(x_nchw, self.w_block, self.bias_col)


if __name__ == "__main__":
    key = jax.random.PRNGKey(0)
    k_x, k_model = jax.random.split(key)
    x = jax.random.normal(k_x, (N, CIN, H, W), jnp.float32)  # NCHW like torch

    inner = TinyConvModel(k_model)
    wrapper = ModelWrapperJAX(inner)

    out = wrapper(x)
    jax.block_until_ready(out.logits)
    jax.block_until_ready(out.features)

    # Reference check against XLA conv (same NCHW semantics as torch.nn.Conv2d).
    ref = lax.conv_general_dilated(
        x, inner.w_oihw, window_strides=(1, 1), padding="SAME",
        dimension_numbers=("NCHW", "OIHW", "NCHW"))
    ref = jnp.maximum(ref + inner.bias[None, :, None, None], 0.0)
    ref_pool = jnp.mean(ref, axis=(2, 3))

    assert out._fields == ("features", "logits")  # sorted namedtuple keys
    assert jnp.allclose(out.logits, ref, atol=1e-4, rtol=1e-4)
    assert jnp.allclose(out.features, ref_pool, atol=1e-4, rtol=1e-4)

    print("KERNEL_OK")
</pallas_src>

<mosaic_0001>
module attributes {stable_mosaic.version = 11 : i64} {
  func.func @_conv_relu_pool_kernel(%arg0: memref<8x256xf32, #tpu.memory_space<vmem>>, %arg1: memref<16x72xf32, #tpu.memory_space<vmem>>, %arg2: memref<16x1xf32, #tpu.memory_space<vmem>>, %arg3: memref<16x256xf32, #tpu.memory_space<vmem>>, %arg4: memref<16x1xf32, #tpu.memory_space<vmem>>) attributes {dimension_semantics = [], scalar_prefetch = 0 : i64, scratch_operands = 0 : i64, tpu.core_type = #tpu.core_type<tc>} {
    %c0 = arith.constant 0 : index
    %c0_0 = arith.constant 0 : index
    %0 = vector.load %arg0[%c0, %c0_0] : memref<8x256xf32, #tpu.memory_space<vmem>>, vector<8x256xf32>
    %1 = tpu.iota {dimensions = array<i32: 1>} : vector<8x256xi32>
    %c4_i32 = arith.constant 4 : i32
    %2 = vector.broadcast %c4_i32 : i32 to vector<8x256xi32>
    %3 = arith.shrsi %1, %2 : vector<8x256xi32>
    %c15_i32 = arith.constant 15 : i32
    %4 = vector.broadcast %c15_i32 : i32 to vector<8x256xi32>
    %5 = arith.andi %1, %4 : vector<8x256xi32>
    %c-1_i32 = arith.constant -1 : i32
    %6 = vector.broadcast %c-1_i32 : i32 to vector<8x256xi32>
    %7 = arith.addi %3, %6 : vector<8x256xi32>
    %c0_i32 = arith.constant 0 : i32
    %8 = vector.broadcast %c0_i32 : i32 to vector<8x256xi32>
    %9 = arith.cmpi sge, %7, %8 : vector<8x256xi32>
    %c-1_i32_1 = arith.constant -1 : i32
    %10 = vector.broadcast %c-1_i32_1 : i32 to vector<8x256xi32>
    %11 = arith.addi %3, %10 : vector<8x256xi32>
    %c16_i32 = arith.constant 16 : i32
    %12 = vector.broadcast %c16_i32 : i32 to vector<8x256xi32>
    %13 = arith.cmpi slt, %11, %12 : vector<8x256xi32>
    %14 = arith.andi %9, %13 : vector<8x256xi1>
    %c0_i32_2 = arith.constant 0 : i32
    %15 = vector.broadcast %c0_i32_2 : i32 to vector<8x256xi32>
    %16 = arith.addi %3, %15 : vector<8x256xi32>
    %c0_i32_3 = arith.constant 0 : i32
    %17 = vector.broadcast %c0_i32_3 : i32 to vector<8x256xi32>
    %18 = arith.cmpi sge, %16, %17 : vector<8x256xi32>
    %c0_i32_4 = arith.constant 0 : i32
    %19 = vector.broadcast %c0_i32_4 : i32 to vector<8x256xi32>
    %20 = arith.addi %3, %19 : vector<8x256xi32>
    %c16_i32_5 = arith.constant 16 : i32
    %21 = vector.broadcast %c16_i32_5 : i32 to vector<8x256xi32>
    %22 = arith.cmpi slt, %20, %21 : vector<8x256xi32>
    %23 = arith.andi %18, %22 : vector<8x256xi1>
    %c1_i32 = arith.constant 1 : i32
    %24 = vector.broadcast %c1_i32 : i32 to vector<8x256xi32>
    %25 = arith.addi %3, %24 : vector<8x256xi32>
    %c0_i32_6 = arith.constant 0 : i32
    %26 = vector.broadcast %c0_i32_6 : i32 to vector<8x256xi32>
    %27 = arith.cmpi sge, %25, %26 : vector<8x256xi32>
    %c1_i32_7 = arith.constant 1 : i32
    %28 = vector.broadcast %c1_i32_7 : i32 to vector<8x256xi32>
    %29 = arith.addi %3, %28 : vector<8x256xi32>
    %c16_i32_8 = arith.constant 16 : i32
    %30 = vector.broadcast %c16_i32_8 : i32 to vector<8x256xi32>
    %31 = arith.cmpi slt, %29, %30 : vector<8x256xi32>
    %32 = arith.andi %27, %31 : vector<8x256xi1>
    %c-1_i32_9 = arith.constant -1 : i32
    %33 = vector.broadcast %c-1_i32_9 : i32 to vector<8x256xi32>
    %34 = arith.addi %5, %33 : vector<8x256xi32>
    %c0_i32_10 = arith.constant 0 : i32
    %35 = vector.broadcast %c0_i32_10 : i32 to vector<8x256xi32>
    %36 = arith.cmpi sge, %34, %35 : vector<8x256xi32>
    %c-1_i32_11 = arith.constant -1 : i32
    %37 = vector.broadcast %c-1_i32_11 : i32 to vector<8x256xi32>
    %38 = arith.addi %5, %37 : vector<8x256xi32>
    %c16_i32_12 = arith.constant 16 : i32
    %39 = vector.broadcast %c16_i32_12 : i32 to vector<8x256xi32>
    %40 = arith.cmpi slt, %38, %39 : vector<8x256xi32>
    %41 = arith.andi %36, %40 : vector<8x256xi1>
    %c0_i32_13 = arith.constant 0 : i32
    %42 = vector.broadcast %c0_i32_13 : i32 to vector<8x256xi32>
    %43 = arith.addi %5, %42 : vector<8x256xi32>
    %c0_i32_14 = arith.constant 0 : i32
    %44 = vector.broadcast %c0_i32_14 : i32 to vector<8x256xi32>
    %45 = arith.cmpi sge, %43, %44 : vector<8x256xi32>
    %c0_i32_15 = arith.constant 0 : i32
    %46 = vector.broadcast %c0_i32_15 : i32 to vector<8x256xi32>
    %47 = arith.addi %5, %46 : vector<8x256xi32>
    %c16_i32_16 = arith.constant 16 : i32
    %48 = vector.broadcast %c16_i32_16 : i32 to vector<8x256xi32>
    %49 = arith.cmpi slt, %47, %48 : vector<8x256xi32>
    %50 = arith.andi %45, %49 : vector<8x256xi1>
    %c1_i32_17 = arith.constant 1 : i32
    %51 = vector.broadcast %c1_i32_17 : i32 to vector<8x256xi32>
    %52 = arith.addi %5, %51 : vector<8x256xi32>
    %c0_i32_18 = arith.constant 0 : i32
    %53 = vector.broadcast %c0_i32_18 : i32 to vector<8x256xi32>
    %54 = arith.cmpi sge, %52, %53 : vector<8x256xi32>
    %c1_i32_19 = arith.constant 1 : i32
    %55 = vector.broadcast %c1_i32_19 : i32 to vector<8x256xi32>
    %56 = arith.addi %5, %55 : vector<8x256xi32>
    %c16_i32_20 = arith.constant 16 : i32
    %57 = vector.broadcast %c16_i32_20 : i32 to vector<8x256xi32>
    %58 = arith.cmpi slt, %56, %57 : vector<8x256xi32>
    %59 = arith.andi %54, %58 : vector<8x256xi1>
    %c17_i32 = arith.constant 17 : i32
    %60 = tpu.dynamic_rotate %0 by %c17_i32 dim 1 : vector<8x256xf32>, i32 -> vector<8x256xf32>
    %61 = arith.andi %14, %41 : vector<8x256xi1>
    %cst = arith.constant 0.000000e+00 : f32
    %62 = vector.broadcast %cst : f32 to vector<8x256xf32>
    %63 = arith.select %61, %60, %62 : vector<8x256xi1>, vector<8x256xf32>
    %c16_i32_21 = arith.constant 16 : i32
    %64 = tpu.dynamic_rotate %0 by %c16_i32_21 dim 1 : vector<8x256xf32>, i32 -> vector<8x256xf32>
    %65 = arith.andi %14, %50 : vector<8x256xi1>
    %cst_22 = arith.constant 0.000000e+00 : f32
    %66 = vector.broadcast %cst_22 : f32 to vector<8x256xf32>
    %67 = arith.select %65, %64, %66 : vector<8x256xi1>, vector<8x256xf32>
    %c15_i32_23 = arith.constant 15 : i32
    %68 = tpu.dynamic_rotate %0 by %c15_i32_23 dim 1 : vector<8x256xf32>, i32 -> vector<8x256xf32>
    %69 = arith.andi %14, %59 : vector<8x256xi1>
    %cst_24 = arith.constant 0.000000e+00 : f32
    %70 = vector.broadcast %cst_24 : f32 to vector<8x256xf32>
    %71 = arith.select %69, %68, %70 : vector<8x256xi1>, vector<8x256xf32>
    %c1_i32_25 = arith.constant 1 : i32
    %72 = tpu.dynamic_rotate %0 by %c1_i32_25 dim 1 : vector<8x256xf32>, i32 -> vector<8x256xf32>
    %73 = arith.andi %23, %41 : vector<8x256xi1>
    %cst_26 = arith.constant 0.000000e+00 : f32
    %74 = vector.broadcast %cst_26 : f32 to vector<8x256xf32>
    %75 = arith.select %73, %72, %74 : vector<8x256xi1>, vector<8x256xf32>
    %76 = arith.andi %23, %50 : vector<8x256xi1>
    %cst_27 = arith.constant 0.000000e+00 : f32
    %77 = vector.broadcast %cst_27 : f32 to vector<8x256xf32>
    %78 = arith.select %76, %0, %77 : vector<8x256xi1>, vector<8x256xf32>
    %c255_i32 = arith.constant 255 : i32
    %79 = tpu.dynamic_rotate %0 by %c255_i32 dim 1 : vector<8x256xf32>, i32 -> vector<8x256xf32>
    %80 = arith.andi %23, %59 : vector<8x256xi1>
    %cst_28 = arith.constant 0.000000e+00 : f32
    %81 = vector.broadcast %cst_28 : f32 to vector<8x256xf32>
    %82 = arith.select %80, %79, %81 : vector<8x256xi1>, vector<8x256xf32>
    %c241_i32 = arith.constant 241 : i32
    %83 = tpu.dynamic_rotate %0 by %c241_i32 dim 1 : vector<8x256xf32>, i32 -> vector<8x256xf32>
    %84 = arith.andi %32, %41 : vector<8x256xi1>
    %cst_29 = arith.constant 0.000000e+00 : f32
    %85 = vector.broadcast %cst_29 : f32 to vector<8x256xf32>
    %86 = arith.select %84, %83, %85 : vector<8x256xi1>, vector<8x256xf32>
    %c240_i32 = arith.constant 240 : i32
    %87 = tpu.dynamic_rotate %0 by %c240_i32 dim 1 : vector<8x256xf32>, i32 -> vector<8x256xf32>
    %88 = arith.andi %32, %50 : vector<8x256xi1>
    %cst_30 = arith.constant 0.000000e+00 : f32
    %89 = vector.broadcast %cst_30 : f32 to vector<8x256xf32>
    %90 = arith.select %88, %87, %89 : vector<8x256xi1>, vector<8x256xf32>
    %c239_i32 = arith.constant 239 : i32
    %91 = tpu.dynamic_rotate %0 by %c239_i32 dim 1 : vector<8x256xf32>, i32 -> vector<8x256xf32>
    %92 = arith.andi %32, %59 : vector<8x256xi1>
    %cst_31 = arith.constant 0.000000e+00 : f32
    %93 = vector.broadcast %cst_31 : f32 to vector<8x256xf32>
    %94 = arith.select %92, %91, %93 : vector<8x256xi1>, vector<8x256xf32>
    %95 = tpu.concatenate %63, %67, %71, %75, %78, %82, %86, %90, %94 in 0 : vector<8x256xf32>, vector<8x256xf32>, vector<8x256xf32>, vector<8x256xf32>, vector<8x256xf32>, vector<8x256xf32>, vector<8x256xf32>, vector<8x256xf32>, vector<8x256xf32> -> vector<72x256xf32>
    %c0_32 = arith.constant 0 : index
    %c0_33 = arith.constant 0 : index
    %96 = vector.load %arg1[%c0_32, %c0_33] : memref<16x72xf32, #tpu.memory_space<vmem>>, vector<16x72xf32>
    %cst_34 = arith.constant dense<0.000000e+00> : vector<16x256xf32>
    %97 = tpu.matmul %96, %95, %cst_34 {dimension_numbers = #tpu.dot_dimension_numbers<[1], [0], [0], [1], [0, 0, 1, 1], [], []>, precision = #tpu.contract_precision<fp32>} : vector<16x72xf32>, vector<72x256xf32>, vector<16x256xf32> -> vector<16x256xf32>
    %c0_35 = arith.constant 0 : index
    %c0_36 = arith.constant 0 : index
    %98 = vector.load %arg2[%c0_35, %c0_36] : memref<16x1xf32, #tpu.memory_space<vmem>>, vector<16x1xf32>
    %99 = vector.broadcast %98 : vector<16x1xf32> to vector<16x256xf32>
    %100 = arith.addf %97, %99 : vector<16x256xf32>
    %cst_37 = arith.constant 0.000000e+00 : f32
    %101 = vector.broadcast %cst_37 : f32 to vector<16x256xf32>
    %102 = arith.maximumf %100, %101 : vector<16x256xf32>
    %c0_38 = arith.constant 0 : index
    %c0_39 = arith.constant 0 : index
    %103 = vector.load %arg3[%c0_38, %c0_39] : memref<16x256xf32, #tpu.memory_space<vmem>>, vector<16x256xf32>
    tpu.vector_store %arg3[%c0_38, %c0_39], %102 {strides = array<i32>} : memref<16x256xf32, #tpu.memory_space<vmem>>, vector<16x256xf32>,
    %cst_40 = arith.constant dense<0.000000e+00> : vector<16xf32>
    %104 = vector.multi_reduction <add>, %102, %cst_40 [1] : vector<16x256xf32> to vector<16xf32>
    %105 = vector.shape_cast %104 : vector<16xf32> to vector<16x1xf32>
    %cst_41 = arith.constant 3.906250e-03 : f32
    %106 = vector.broadcast %cst_41 : f32 to vector<16x1xf32>
    %107 = arith.mulf %105, %106 : vector<16x1xf32>
    %c0_42 = arith.constant 0 : index
    %c0_43 = arith.constant 0 : index
    %108 = vector.load %arg4[%c0_42, %c0_43] : memref<16x1xf32, #tpu.memory_space<vmem>>, vector<16x1xf32>
    tpu.vector_store %arg4[%c0_42, %c0_43], %107 {strides = array<i32>} : memref<16x1xf32, #tpu.memory_space<vmem>>, vector<16x1xf32>,
    return
  }
}

</mosaic_0001>

<bundles_post_ra>
// kernel: _forward.1
= control target key start
LH: loop header
LB: loop body
LE: loop exit
PB: predicated region body
PF: predicated region fallthrough
CT: control target
= control target key end

     0   :  { %s943_s17 = smov 112   ;;  %s944_s18 = smov 111   ;;  %v949_v2 = vmov 0.0   ;;  %v952_v3 = vmov 0   ;;  %v18_v6 = vlaneseq  ;;  %vm175_vm5 = vcmask 588800   ;;  %s1562_s0 = inlined_call_operand.vmem [shape: f32[8,256], index: 0, kind: input, shape index: {}]   ;;  %s1563_s2 = inlined_call_operand.vmem [shape: f32[16,1], index: 2, kind: input, shape index: {}]   ;;  %s1564_s1 = inlined_call_operand.vmem [shape: f32[16,72], index: 1, kind: input, shape index: {}]   ;;  %s1565_s3 = inlined_call_operand.vmem [shape: f32[16,256], index: 3, kind: output, shape index: {0}]   ;;  %s1566_s4 = inlined_call_operand.vmem [shape: f32[16,1], index: 4, kind: output, shape index: {1}]  }
   0x1   :  { %v16_v0 = vld [vmem:[%s1562_s0] sm:$0xff]  ;;  %v17_v1 = vld [vmem:[%s1562_s0 + $0x8] sm:$0xff]  ;;  %s945_s21 = smov 113   ;;  %s946_s22 = smov 127   ;;  %264 = vmatprep.mubr.f32.mxu0 %v949_v2  ;;  %441 = vmatprep.mubr.f32.mxu1 %v949_v2 }
   0x2   :  { %139 = vrot.lane.b32.xlu1 %v16_v0, %s943_s17  ;;  %150 = vrot.lane.b32.xlu0 %v16_v0, %s944_s18  ;;  %s947_s23 = smov 1   ;;  %s948_s24 = smov 15   ;;  %v163_v4 = vld [vmem:[%s1563_s2] sm:$0xff]  ;;  %v164_v5 = vld [vmem:[%s1563_s2 + $0x8] sm:$0xff]  ;;  %v992_v7 = vand.u32 127, %v18_v6 }
   0x3   :  { %s950_s0 = smov 16   ;;  %s951_s25 = smov 17   ;;  %941 = vset.pattern.permute.xlu0 %v952_v3  ;;  %942 = vset.pattern.permute.xlu1 %v952_v3  ;;  %v161_v18 = vld [vmem:[%s1564_s1] sm:$0xff]  ;;  %v162_v56 = vld [vmem:[%s1564_s1 + $0x8] sm:$0xff] }
   0x4   :  { %v21_v8 = vshra.s32 %v992_v7, 4  ;;  %v20_v9 = vadd.s32 128, %v992_v7  ;;  %v23_v13 = vand.u32 15, %v992_v7  ;;  %v177_v24 = vsel %vm175_vm5, %v161_v18, 0 }
   0x5   :  { %v1041_v34 = vand.u32 4294901760, %v177_v24  ;;  %vm143_vm15 = vcmp.lt.s32.totalorder %v992_v7, 112 }
   0x6   :  { %141 = vrot.lane.b32.xlu1 %v17_v1, %s943_s17  ;;  %152 = vrot.lane.b32.xlu0 %v17_v1, %s944_s18  ;;  %vm33_vm0 = vcmp.ge.s32.totalorder %v21_v8, 0  ;;  %vm35_vm1 = vcmp.lt.s32.totalorder %v21_v8, 16  ;;  %v22_v11 = vshra.s32 %v20_v9, 4  ;;  %v24_v14 = vand.u32 15, %v20_v9 }
   0x7   :  { %vm996_vm2 = vmand %vm33_vm0, %vm35_vm1  ;;  %v39_v15 = vadd.s32 1, %v21_v8  ;;  %v1008_v19 = vadd.s32 1, %v23_v13  ;;  %v1028_v26 = vadd.s32 4294967295, %v23_v13  ;;  %v1038_v32 = vadd.s32 4294967295, %v21_v8 }
   0x8   :  { %v115_v12 = vsel %vm996_vm2, %v16_v0, 0.0  ;;  %v40_v17 = vadd.s32 1, %v22_v11  ;;  %vm34_vm3 = vcmp.ge.s32.totalorder %v22_v11, 0  ;;  %vm36_vm4 = vcmp.lt.s32.totalorder %v22_v11, 16 }
   0x9   :  { %v1003_v16 = vand.u32 4294901760, %v115_v12  ;;  %v1010_v20 = vadd.s32 1, %v24_v14  ;;  %vm41_vm6 = vcmp.ge.s32.totalorder %v39_v15, 0  ;;  %vm43_vm7 = vcmp.lt.s32.totalorder %v39_v15, 16  ;;  %vm1012_vm8 = vmand %vm34_vm3, %vm36_vm4 }
   0xa   :  { %130 = vrot.lane.b32.xlu1 %v17_v1, %s945_s21  ;;  %128 = vrot.lane.b32.xlu0 %v16_v0, %s945_s21  ;;  %vm42_vm9 = vcmp.ge.s32.totalorder %v40_v17, 0  ;;  %vm44_vm10 = vcmp.lt.s32.totalorder %v40_v17, 16  ;;  %v116_v23 = vsel %vm1012_vm8, %v17_v1, 0.0  ;;  %vm1022_vm11 = vmand %vm41_vm6, %vm43_vm7  ;;  %vm65_vm12 = vcmp.lt.s32.totalorder %v1008_v19, 16 }
   0xb   :  { %v1017_v22 = vsub.f32 %v115_v12, %v1003_v16  ;;  %vm66_vm13 = vcmp.lt.s32.totalorder %v1010_v20, 16  ;;  %v1030_v27 = vadd.s32 4294967295, %v24_v14  ;;  %vm1032_vm14 = vmand %vm42_vm9, %vm44_vm10  ;;  %v1036_v31 = vand.u32 4294901760, %v116_v23 }
   0xc   :  { %v1043_v35 = vadd.s32 4294967295, %v22_v11  ;;  %vm154_vm0 = vcmp.lt.s32.totalorder %v992_v7, 111  ;;  %vm1051_vm1 = vmand %vm1022_vm11, %vm65_vm12  ;;  %vm49_vm4 = vcmp.ge.s32.totalorder %v1028_v26, 0  ;;  %vm132_vm7 = vcmp.lt.s32.totalorder %v992_v7, 113 }
   0xd   :  { %v1567_v33 = vand.u32 4294901760, %v1017_v22  ;;  %vm1059_vm3 = vmand %vm1032_vm14, %vm66_vm13  ;;  %vm50_vm6 = vcmp.ge.s32.totalorder %v1030_v27, 0  ;;  %vm121_vm9 = vcmp.lt.s32.totalorder %v992_v7, 127  ;;  %v1069_v40 = vsub.f32 %v116_v23, %v1036_v31 }
   0xe   :  { %119 = vrot.lane.b32.xlu1 %v17_v1, %s946_s22  ;;  %117 = vrot.lane.b32.xlu0 %v16_v0, %s946_s22  ;;  %v1077_v42 = vsub.f32 %v177_v24, %v1041_v34  ;;  %vm28_vm10 = vcmp.ge.s32.totalorder %v1043_v35, 0  ;;  %v1153_v8 = vsel %vm175_vm5, %v162_v56, 0  ;;  %vm1185_vm5 = vmand %vm996_vm2, %vm49_vm4 }
   0xf   :  { %v1074_v41 = vsub.f32 %v1017_v22, %v1567_v33  ;;  %v1568_v60 = vand.u32 4294901760, %v1069_v40 }
  0x10   :  { %v1573_v6 = vand.u32 4294901760, %v1077_v42 }
  0x11   :  { %v359_v61 = vand.u32 4294901760, %v1074_v41 }
  0x12   :  { %104 = vrot.lane.b32.xlu1 %v17_v1, %s947_s23  ;;  %102 = vrot.lane.b32.xlu0 %v16_v0, %s947_s23 }
  0x16   :  { %93 = vrot.lane.b32.xlu1 %v17_v1, %s948_s24  ;;  %91 = vrot.lane.b32.xlu0 %v16_v0, %s948_s24 }
  0x1a   :  { %82 = vrot.lane.b32.xlu1 %v17_v1, %s950_s0  ;;  %80 = vrot.lane.b32.xlu0 %v16_v0, %s950_s0 }
  0x1e   :  { %71 = vrot.lane.b32.xlu1 %v17_v1, %s951_s25  ;;  %69 = vrot.lane.b32.xlu0 %v16_v0, %s951_s25 }
  0x22   :  { %167 = vperm.xlu0 %941, %v163_v4   ;;  %172 = vperm.xlu1 %942, %v164_v5  }
  0x74   :  { %v140_v28 = vpop.permute.xlu1 %139  ;;  %v151_v29 = vpop.permute.xlu0 %150 }
  0x78   :  { %v142_v38 = vpop.permute.xlu1 %141  ;;  %v153_v39 = vpop.permute.xlu0 %152 }
  0x79   :  { %v144_v43 = vsel %vm143_vm15, %v140_v28, %v142_v38  ;;  %v145_v44 = vsel %vm143_vm15, %v142_v38, %v140_v28  ;;  %v155_v45 = vsel %vm154_vm0, %v151_v29, %v153_v39  ;;  %v156_v46 = vsel %vm154_vm0, %v153_v39, %v151_v29  ;;  %vm1105_vm0 = vmand %vm1022_vm11, %vm49_vm4 }
  0x7a   :  { %v148_v47 = vsel %vm1022_vm11, %v144_v43, 0.0  ;;  %v149_v48 = vsel %vm1032_vm14, %v145_v44, 0.0  ;;  %v159_v49 = vsel %vm1051_vm1, %v155_v45, 0.0  ;;  %v160_v50 = vsel %vm1059_vm3, %v156_v46, 0.0  ;;  %vm1116_vm1 = vmand %vm1032_vm14, %vm50_vm6 }
  0x7b   :  { %v1093_v51 = vand.u32 4294901760, %v149_v48  ;;  %v1095_v52 = vand.u32 4294901760, %v148_v47  ;;  %v1097_v53 = vand.u32 4294901760, %v160_v50  ;;  %v1099_v54 = vand.u32 4294901760, %v159_v49  ;;  %vm1146_vm14 = vmand %vm996_vm2, %vm65_vm12 }
  0x7c   :  { %v131_v57 = vpop.permute.xlu1 %130  ;;  %v129_v59 = vpop.permute.xlu0 %128  ;;  %vm29_vm3 = vcmp.lt.s32.totalorder %v1038_v32, 16  ;;  %vm30_vm11 = vcmp.lt.s32.totalorder %v1043_v35, 16  ;;  %vm95_vm15 = vcmp.lt.s32.totalorder %v992_v7, 15  ;;  %vm1210_vm2 = vmand %vm1012_vm8, %vm50_vm6  ;;  %v1295_v44 = vand.u32 4294901760, %v1153_v8 }
  0x7d   :  { %v1125_v62 = vsub.f32 %v149_v48, %v1093_v51  ;;  %v1128_v63 = vsub.f32 %v148_v47, %v1095_v52  ;;  %v1131_v0 = vsub.f32 %v160_v50, %v1097_v53  ;;  %v1134_v1 = vsub.f32 %v159_v49, %v1099_v54  ;;  %197 = vmatprep.subr.mxu0 %v1097_v53 }
  0x7e   :  { %v133_v3 = vsel %vm132_vm7, %v129_v59, %v131_v57  ;;  %v134_v4 = vsel %vm132_vm7, %v131_v57, %v129_v59  ;;  %199 = vmatpush1.msra.mxu0 %v1099_v54  ;;  %vm1164_vm7 = vmand %vm1012_vm8, %vm66_vm13 }
  0x7f   :  { %v137_v9 = vsel %vm1105_vm0, %v133_v3, 0.0  ;;  %v138_v11 = vsel %vm1116_vm1, %v134_v4, 0.0  ;;  %201 = vmatprep.subr.mxu0 %v1093_v51  ;;  %v303_v13 = vand.u32 4294901760, %v1131_v0  ;;  %v309_v14 = vand.u32 4294901760, %v1134_v1  ;;  %vm1238_vm8 = vmand %vm28_vm10, %vm30_vm11 }
  0x80   :  { %v1170_v15 = vand.u32 4294901760, %v138_v11  ;;  %v1172_v17 = vand.u32 4294901760, %v137_v9  ;;  %v120_v18 = vpop.permute.xlu1 %119  ;;  %203 = vmatpush1.msra.mxu0 %v1095_v52  ;;  %v118_v23 = vpop.permute.xlu0 %117  ;;  %v315_v24 = vand.u32 4294901760, %v1125_v62  ;;  %v321_v25 = vand.u32 4294901760, %v1128_v63 }
  0x81   :  { %v122_v28 = vsel %vm121_vm9, %v118_v23, %v120_v18  ;;  %v123_v29 = vsel %vm121_vm9, %v120_v18, %v118_v23  ;;  %v304_v36 = vsub.f32 %v1131_v0, %v303_v13  ;;  %v310_v37 = vsub.f32 %v1134_v1, %v309_v14 }
  0x82   :  { %v1196_v38 = vsub.f32 %v138_v11, %v1170_v15  ;;  %v1199_v39 = vsub.f32 %v137_v9, %v1172_v17  ;;  %v126_v10 = vsel %vm1146_vm14, %v122_v28, 0.0  ;;  %v127_v43 = vsel %vm1164_vm7, %v123_v29, 0.0  ;;  %205 = vmatprep.subr.mxu0 %v1170_v15  ;;  %vm1278_vm7 = vmand %vm1238_vm8, %vm66_vm13 }
  0x83   :  { %vm84_vm9 = vcmp.lt.s32.totalorder %v992_v7, 16  ;;  %v1215_v45 = vand.u32 4294901760, %v127_v43  ;;  %v1217_v46 = vand.u32 4294901760, %v126_v10  ;;  %207 = vmatpush1.msra.mxu0 %v1172_v17  ;;  %v305_v47 = vand.u32 4294901760, %v304_v36  ;;  %vm1361_vm13 = vmand %vm1238_vm8, %vm50_vm6 }
  0x84   :  { %v311_v48 = vand.u32 4294901760, %v310_v37  ;;  %vm1599_vm0 = vcmp.ge.s32.totalorder %v1038_v32, 0  ;;  %v105_v49 = vpop.permute.xlu1 %104  ;;  %v103_v50 = vpop.permute.xlu0 %102  ;;  %v316_v55 = vsub.f32 %v1125_v62, %v315_v24  ;;  %v322_v56 = vsub.f32 %v1128_v63, %v321_v25 }
  0x85   :  { %vm1224_vm1 = vmand %vm1599_vm0, %vm29_vm3  ;;  %v327_v57 = vand.u32 4294901760, %v1196_v38  ;;  %v1574_v58 = vand.u32 4294901760, %v1199_v39  ;;  %v1245_v59 = vsub.f32 %v127_v43, %v1215_v45  ;;  %v1248_v3 = vsub.f32 %v126_v10, %v1217_v46  ;;  %209 = vmatprep.subr.mxu0 %v1215_v45  ;;  %306 = vmatprep.subr.mxu1 %v305_v47 }
  0x86   :  { %vm1604_vm3 = vcmp.lt.s32.totalorder %v992_v7, 1  ;;  %211 = vmatpush1.msra.mxu0 %v1217_v46  ;;  %v317_v11 = vand.u32 4294901760, %v316_v55  ;;  %v323_v12 = vand.u32 4294901760, %v322_v56  ;;  %vm1264_vm10 = vmand %vm1224_vm1, %vm65_vm12  ;;  %vm73_vm11 = vcmp.lt.s32.totalorder %v992_v7, 17  ;;  %312 = vmatpush1.msra.mxu1 %v311_v48 }
  0x87   :  { %v107_v4 = vsel %vm1604_vm3, %v103_v50, %v105_v49  ;;  %vm1605_vm14 = vmmov %vm1604_vm3  ;;  %213 = vmatprep.subr.mxu0 %v1036_v31  ;;  %v328_v29 = vsub.f32 %v1196_v38, %v327_v57  ;;  %v334_v30 = vsub.f32 %v1199_v39, %v1574_v58  ;;  %v1572_v20 = vand.u32 4294901760, %v1245_v59 }
  0x88   :  { %v108_v35 = vsel %vm1605_vm14, %v105_v49, %v103_v50  ;;  %v112_v9 = vsel %vm1210_vm2, %v107_v4, 0.0  ;;  %318 = vmatprep.subr.mxu1 %v317_v11  ;;  %v94_v36 = vpop.permute.xlu1 %93  ;;  %v92_v37 = vpop.permute.xlu0 %91  ;;  %215 = vmatpush1.msra.mxu0 %v1003_v16  ;;  %v1569_v10 = vand.u32 4294901760, %v1248_v3  ;;  %v352_v43 = vsub.f32 %v1069_v40, %v1568_v60  ;;  %vm1348_vm12 = vmand %vm1224_vm1, %vm49_vm4 }
  0x89   :  { %v111_v5 = vsel %vm1185_vm5, %v108_v35, 0.0  ;;  %v1269_v23 = vand.u32 4294901760, %v112_v9  ;;  %324 = vmatpush1.msra.mxu1 %v323_v12  ;;  %v96_v49 = vsel %vm95_vm15, %v92_v37, %v94_v36  ;;  %v97_v50 = vsel %vm95_vm15, %v94_v36, %v92_v37 }
  0x8a   :  { %v1271_v28 = vand.u32 4294901760, %v111_v5  ;;  %v100_v55 = vsel %vm1264_vm10, %v97_v50, 0.0  ;;  %v101_v56 = vsel %vm1278_vm7, %v96_v49, 0.0  ;;  %v329_v4 = vand.u32 4294901760, %v328_v29 }
  0x8b   :  { %v1298_v47 = vsub.f32 %v112_v9, %v1269_v23  ;;  %217 = vmatprep.subr.mxu0 %v1269_v23  ;;  %v335_v35 = vand.u32 4294901760, %v334_v30  ;;  %v1312_v9 = vand.u32 4294901760, %v101_v56  ;;  %v340_v11 = vsub.f32 %v1245_v59, %v1572_v20 }
  0x8c   :  { %v1301_v48 = vsub.f32 %v111_v5, %v1271_v28  ;;  %v1314_v5 = vand.u32 4294901760, %v100_v55  ;;  %219 = vmatpush1.msra.mxu0 %v1271_v28  ;;  %v346_v12 = vsub.f32 %v1248_v3, %v1569_v10  ;;  %330 = vmatprep.subr.mxu1 %v329_v4  ;;  %v83_v18 = vpop.permute.xlu1 %82  ;;  %v81_v19 = vpop.permute.xlu0 %80  ;;  %v353_v36 = vand.u32 4294901760, %v352_v43 }
  0x8d   :  { %v1570_v29 = vand.u32 4294901760, %v1298_v47  ;;  %v1327_v37 = vsub.f32 %v1153_v8, %v1295_v44  ;;  %v1330_v49 = vsub.f32 %v101_v56, %v1312_v9  ;;  %336 = vmatpush1.msra.mxu1 %v335_v35  ;;  %v85_v4 = vsel %vm84_vm9, %v81_v19, %v83_v18  ;;  %221 = vmatprep.subr.mxu0 %v1312_v9 }
  0x8e   :  { %v1571_v30 = vand.u32 4294901760, %v1301_v48  ;;  %v1333_v50 = vsub.f32 %v100_v55, %v1314_v5  ;;  %v86_v43 = vsel %vm84_vm9, %v83_v18, %v81_v19  ;;  %v90_v8 = vsel %vm1238_vm8, %v85_v4, 0.0  ;;  %223 = vmatpush1.msra.mxu0 %v1314_v5 }
  0x8f   :  { %v89_v33 = vsel %vm1224_vm1, %v86_v43, 0.0  ;;  %v341_v56 = vand.u32 4294901760, %v340_v11  ;;  %v347_v60 = vand.u32 4294901760, %v346_v12  ;;  %v1352_v35 = vand.u32 4294901760, %v90_v8 }
  0x90   :  { %v1354_v18 = vand.u32 4294901760, %v89_v33  ;;  %v364_v26 = vsub.f32 %v1298_v47, %v1570_v29  ;;  %v370_v21 = vsub.f32 %v1301_v48, %v1571_v30  ;;  %v72_v12 = vpop.permute.xlu1 %71  ;;  %v70_v19 = vpop.permute.xlu0 %69  ;;  %v375_v4 = vand.u32 4294901760, %v1330_v49 }
  0x91   :  { %342 = vmatprep.subr.mxu1 %v341_v56  ;;  %v381_v27 = vand.u32 4294901760, %v1333_v50  ;;  %v268_v32 = vsub.f32 %v1077_v42, %v1573_v6  ;;  %v278_v43 = vand.u32 4294901760, %v1327_v37  ;;  %v1378_v10 = vsub.f32 %v90_v8, %v1352_v35  ;;  %225 = vmatprep.subr.mxu0 %v1352_v35 }
  0x92   :  { %v1381_v29 = vsub.f32 %v89_v33, %v1354_v18  ;;  %348 = vmatpush1.msra.mxu1 %v347_v60  ;;  %v74_v56 = vsel %vm73_vm11, %v70_v19, %v72_v12  ;;  %v75_v30 = vsel %vm73_vm11, %v72_v12, %v70_v19  ;;  %v365_v8 = vand.u32 4294901760, %v364_v26  ;;  %227 = vmatpush1.msra.mxu0 %v1354_v18 }
  0x93   :  { %354 = vmatprep.subr.mxu1 %v353_v36  ;;  %v78_v20 = vsel %vm1348_vm12, %v75_v30, 0.0  ;;  %v79_v6 = vsel %vm1361_vm13, %v74_v56, 0.0  ;;  %v371_v58 = vand.u32 4294901760, %v370_v21  ;;  %v376_v7 = vsub.f32 %v1330_v49, %v375_v4 }
  0x94   :  { %v1392_v33 = vand.u32 4294901760, %v79_v6  ;;  %v1394_v60 = vand.u32 4294901760, %v78_v20  ;;  %360 = vmatpush1.msra.mxu1 %v359_v61  ;;  %v382_v36 = vsub.f32 %v1333_v50, %v381_v27  ;;  %v269_v30 = vand.u32 4294901760, %v268_v32 }
  0x95   :  { %366 = vmatprep.subr.mxu1 %v365_v8  ;;  %v387_v55 = vand.u32 4294901760, %v1378_v10  ;;  %v393_v11 = vand.u32 4294901760, %v1381_v29  ;;  %v279_v41 = vsub.f32 %v1327_v37, %v278_v43  ;;  %v377_v21 = vand.u32 4294901760, %v376_v7 }
  0x96   :  { %v1411_v61 = vsub.f32 %v79_v6, %v1392_v33  ;;  %v1414_v26 = vsub.f32 %v78_v20, %v1394_v60  ;;  %372 = vmatpush1.msra.mxu1 %v371_v58  ;;  %229 = vmatprep.subr.mxu0 %v1392_v33  ;;  %v383_v12 = vand.u32 4294901760, %v382_v36  ;;  %vm920_vm4 = vcmask 7168  }
  0x97   :  { %231 = vmatpush1.msra.mxu0 %v1394_v60  ;;  %v388_v19 = vsub.f32 %v1378_v10, %v387_v55  ;;  %v394_v32 = vsub.f32 %v1381_v29, %v393_v11  ;;  %378 = vmatprep.subr.mxu1 %v377_v21  ;;  %v280_v8 = vand.u32 4294901760, %v279_v41 }
  0x98   :  { %472 = vmatprep.subr.mxu0 %v1131_v0  ;;  %v399_v6 = vand.u32 4294901760, %v1411_v61  ;;  %v405_v58 = vand.u32 4294901760, %v1414_v26  ;;  %384 = vmatpush1.msra.mxu1 %v383_v12  ;;  %v1615_v0 = vand.u32 4294901760, %v1245_v59 }
  0x99   :  { %270 = vmatmul.mubr.f32.vlgmr.msra.gmra.mxu0 %v269_v30  ;;  %v389_v20 = vand.u32 4294901760, %v388_v19  ;;  %v395_v56 = vand.u32 4294901760, %v394_v32 }
  0x9a   :  { %475 = vmatpush1.msra.mxu0 %v1134_v1  ;;  %v400_v7 = vsub.f32 %v1411_v61, %v399_v6  ;;  %v406_v36 = vsub.f32 %v1414_v26, %v405_v58  ;;  %275 = vmatprep.mubr.f32.mxu0 %v949_v2  ;;  %v1617_v1 = vand.u32 4294901760, %v1077_v42 }
  0x9b   :  { %390 = vmatprep.subr.mxu1 %v389_v20  ;;  %478 = vmatprep.subr.mxu0 %v1125_v62  ;;  %v1614_v62 = vand.u32 4294901760, %v1199_v39 }
  0x9c   :  { %396 = vmatpush1.msra.mxu1 %v395_v56  ;;  %481 = vmatpush1.msra.mxu0 %v1128_v63  ;;  %v401_v30 = vand.u32 4294901760, %v400_v7  ;;  %v407_v41 = vand.u32 4294901760, %v406_v36  ;;  %v1616_v63 = vand.u32 4294901760, %v1248_v3 }
  0x9d   :  { %484 = vmatprep.subr.mxu0 %v1196_v38  ;;  %281 = vmatmul.mubr.f32.gmra.mxu0 %v280_v8  ;;  %v168_v38 = vpop.permute.xlu0 %167 }
  0x9e   :  { %487 = vmatpush1.msra.mxu0 %v1199_v39  ;;  %402 = vmatprep.subr.mxu1 %v401_v30 }
  0x9f   :  { %490 = vmatprep.subr.mxu0 %v1245_v59  ;;  %408 = vmatpush1.msra.mxu1 %v407_v41 }
  0xa0   :  { %493 = vmatpush1.msra.mxu0 %v1248_v3  ;;  %443 = vmatmul.mubr.f32.vlgmr.msra.gmra.mxu1 %v1041_v34 }
  0xa1   :  { %496 = vmatprep.subr.mxu0 %v1069_v40  ;;  %588 = vmatprep.subr.mxu1 %v1097_v53 }
  0xa2   :  { %499 = vmatpush1.msra.mxu0 %v1017_v22  ;;  %590 = vmatpush1.msra.mxu1 %v1099_v54 }
  0xa3   :  { %502 = vmatprep.subr.mxu0 %v1298_v47  ;;  %592 = vmatprep.subr.mxu1 %v1093_v51 }
  0xa4   :  { %505 = vmatpush1.msra.mxu0 %v1301_v48  ;;  %594 = vmatpush1.msra.mxu1 %v1095_v52 }
  0xa5   :  { %508 = vmatprep.subr.mxu0 %v1330_v49  ;;  %596 = vmatprep.subr.mxu1 %v1170_v15 }
  0xa6   :  { %511 = vmatpush1.msra.mxu0 %v1333_v50  ;;  %598 = vmatpush1.msra.mxu1 %v1172_v17 }
  0xa7   :  { %514 = vmatprep.subr.mxu0 %v1378_v10  ;;  %600 = vmatprep.subr.mxu1 %v1215_v45 }
  0xa8   :  { %517 = vmatpush1.msra.mxu0 %v1381_v29  ;;  %602 = vmatpush1.msra.mxu1 %v1217_v46 }
  0xa9   :  { %520 = vmatprep.subr.mxu0 %v1411_v61  ;;  %604 = vmatprep.subr.mxu1 %v1036_v31 }
  0xaa   :  { %523 = vmatpush1.msra.mxu0 %v1414_v26  ;;  %556 = vmatprep.mubr.f32.mxu0 %v949_v2 }
  0xab   :  { %606 = vmatpush1.msra.mxu1 %v1003_v16  ;;  %559 = vmatmul.mubr.f32.vlgmr.msra.gmra.mxu0 %v1077_v42  ;;  %v1621_v42 = vand.u32 4294901760, %v1301_v48 }
  0xac   :  { %608 = vmatprep.subr.mxu1 %v1269_v23  ;;  %691 = vmatprep.subr.mxu0 %v303_v13  ;;  %v1618_v13 = vand.u32 4294901760, %v1069_v40 }
  0xad   :  { %610 = vmatpush1.msra.mxu1 %v1271_v28  ;;  %695 = vmatpush1.msra.mxu0 %v309_v14  ;;  %v1619_v14 = vand.u32 4294901760, %v1017_v22 }
  0xae   :  { %448 = vmatprep.mubr.f32.mxu1 %v949_v2  ;;  %612 = vmatprep.subr.mxu1 %v1312_v9 }
  0xaf   :  { %699 = vmatprep.subr.mxu0 %v315_v24  ;;  %450 = vmatmul.mubr.f32.gmra.mxu1 %v1295_v44  ;;  %v1620_v24 = vand.u32 4294901760, %v1298_v47 }
  0xb0   :  { %614 = vmatpush1.msra.mxu1 %v1314_v5  ;;  %703 = vmatpush1.msra.mxu0 %v321_v25 }
  0xb1   :  { %564 = vmatprep.mubr.f32.mxu0 %v949_v2  ;;  %616 = vmatprep.subr.mxu1 %v1352_v35 }
  0xb2   :  { %707 = vmatprep.subr.mxu0 %v327_v57  ;;  %567 = vmatmul.mubr.f32.gmra.mxu0 %v1327_v37 }
  0xb3   :  { %618 = vmatpush1.msra.mxu1 %v1354_v18  ;;  %711 = vmatpush1.msra.mxu0 %v1614_v62 }
  0xb4   :  { %620 = vmatprep.subr.mxu1 %v1392_v33  ;;  %715 = vmatprep.subr.mxu0 %v1615_v0 }
  0xb5   :  { %622 = vmatpush1.msra.mxu1 %v1394_v60  ;;  %655 = vmatprep.mubr.f32.mxu1 %v949_v2 }
  0xb6   :  { %719 = vmatpush1.msra.mxu0 %v1616_v63  ;;  %659 = vmatmul.mubr.f32.vlgmr.msra.gmra.mxu1 %v1617_v1 }
  0xb7   :  { %723 = vmatprep.subr.mxu0 %v1618_v13  ;;  %822 = vmatprep.subr.mxu1 %v1097_v53 }
  0xb8   :  { %727 = vmatpush1.msra.mxu0 %v1619_v14  ;;  %824 = vmatpush1.msra.mxu1 %v1099_v54 }
  0xb9   :  { %731 = vmatprep.subr.mxu0 %v1620_v24  ;;  %826 = vmatprep.subr.mxu1 %v1093_v51 }
  0xba   :  { %664 = vmatprep.mubr.f32.mxu1 %v949_v2  ;;  %735 = vmatpush1.msra.mxu0 %v1621_v42 }
  0xbb   :  { %828 = vmatpush1.msra.mxu1 %v1095_v52  ;;  %739 = vmatprep.subr.mxu0 %v375_v4 }
  0xbc   :  { %668 = vmatmul.mubr.f32.gmra.mxu1 %v278_v43  ;;  %830 = vmatprep.subr.mxu1 %v1170_v15 }
  0xbd   :  { %743 = vmatpush1.msra.mxu0 %v381_v27  ;;  %832 = vmatpush1.msra.mxu1 %v1172_v17 }
  0xbe   :  { %747 = vmatprep.subr.mxu0 %v387_v55  ;;  %834 = vmatprep.subr.mxu1 %v1215_v45  ;;  %v173_v45 = vpop.permute.xlu1 %172 }
  0xbf   :  { %751 = vmatpush1.msra.mxu0 %v393_v11  ;;  %836 = vmatpush1.msra.mxu1 %v1217_v46 }
  0xc0   :  { %755 = vmatprep.subr.mxu0 %v399_v6  ;;  %838 = vmatprep.subr.mxu1 %v1036_v31 }
  0xc1   :  { %759 = vmatpush1.msra.mxu0 %v405_v58  ;;  %792 = vmatprep.mubr.f32.mxu0 %v949_v2 }
  0xc2   :  { %840 = vmatpush1.msra.mxu1 %v1003_v16  ;;  %794 = vmatmul.mubr.f32.vlgmr.msra.gmra.mxu0 %v1041_v34 }
  0xc3   :  { %842 = vmatprep.subr.mxu1 %v1269_v23  ;;  %799 = vmatprep.mubr.f32.mxu0 %v949_v2 }
  0xc4   :  { %844 = vmatpush1.msra.mxu1 %v1271_v28  ;;  %889 = vmatprep.mubr.f32.mxu1 %v949_v2 }
  0xc5   :  { %846 = vmatprep.subr.mxu1 %v1312_v9 }
  0xc6   :  { %848 = vmatpush1.msra.mxu1 %v1314_v5  ;;  %801 = vmatmul.mubr.f32.gmra.mxu0 %v1295_v44 }
  0xc7   :  { %850 = vmatprep.subr.mxu1 %v1352_v35 }
  0xc8   :  { %852 = vmatpush1.msra.mxu1 %v1354_v18 }
  0xc9   :  { %854 = vmatprep.subr.mxu1 %v1392_v33 }
  0xca   :  { %856 = vmatpush1.msra.mxu1 %v1394_v60 }
  0xcb   :  { %891 = vmatmul.mubr.f32.vlgmr.msra.gmra.mxu1 %v1041_v34 }
  0xcc   :  { %896 = vmatprep.mubr.f32.mxu1 %v949_v2 }
  0xcf   :  { %898 = vmatmul.mubr.f32.gmra.mxu1 %v1295_v44 }
 0x159   :  { %v271_v16 = vpop.f32.mrf.mxu0 }
 0x15a   :  { %v272_v46 = vadd.f32 %v271_v16, %v168_v38 }
 0x15b   :  { %v273_v22 = vpop.f32.mrf.mxu0 }
 0x15c   :  { %v274_v2 = vadd.f32 %v273_v22, %v168_v38 }
 0x15d   :  { %v282_v31 = vpop.f32.mrf.mxu0 }
 0x15e   :  { %v283_v59 = vadd.f32 %v282_v31, %v173_v45 }
 0x15f   :  { %v284_v51 = vpop.f32.mrf.mxu0 }
 0x160   :  { %v444_v40 = vpop.f32.mrf.mxu1  ;;  %v285_v28 = vadd.f32 %v284_v51, %v173_v45 }
 0x161   :  { %v445_v23 = vadd.f32 %v444_v40, %v272_v46 }
 0x162   :  { %v446_v52 = vpop.f32.mrf.mxu1 }
 0x163   :  { %v447_v47 = vadd.f32 %v446_v52, %v274_v2 }
 0x16b   :  { %v560_v53 = vpop.f32.mrf.mxu0 }
 0x16c   :  { %v561_v48 = vadd.f32 %v560_v53, %v445_v23 }
 0x16d   :  { %v562_v15 = vpop.f32.mrf.mxu0 }
 0x16e   :  { %v563_v5 = vadd.f32 %v562_v15, %v447_v47 }
 0x16f   :  { %v451_v54 = vpop.f32.mrf.mxu1 }
 0x170   :  { %v452_v9 = vadd.f32 %v451_v54, %v283_v59 }
 0x171   :  { %v453_v17 = vpop.f32.mrf.mxu1 }
 0x172   :  { %v568_v25 = vpop.f32.mrf.mxu0  ;;  %v454_v29 = vadd.f32 %v453_v17, %v285_v28 }
 0x173   :  { %v569_v35 = vadd.f32 %v568_v25, %v452_v9 }
 0x174   :  { %v570_v34 = vpop.f32.mrf.mxu0 }
 0x175   :  { %v571_v43 = vadd.f32 %v570_v34, %v454_v29 }
 0x176   :  { %v660_v39 = vpop.f32.mrf.mxu1 }
 0x177   :  { %v661_v37 = vadd.f32 %v660_v39, %v561_v48 }
 0x178   :  { %v662_v57 = vpop.f32.mrf.mxu1 }
 0x179   :  { %v663_v18 = vadd.f32 %v662_v57, %v563_v5 }
 0x17c   :  { %v669_v10 = vpop.f32.mrf.mxu1 }
 0x17d   :  { %v670_v33 = vadd.f32 %v669_v10, %v569_v35 }
 0x17e   :  { %v671_v49 = vpop.f32.mrf.mxu1 }
 0x17f   :  { %v672_v26 = vadd.f32 %v671_v49, %v571_v43 }
 0x182   :  { %v795_v3 = vpop.f32.mrf.mxu0 }
 0x183   :  { %v796_v4 = vadd.f32 %v795_v3, %v661_v37 }
 0x184   :  { %v797_v44 = vpop.f32.mrf.mxu0 }
 0x185   :  { %v798_v60 = vadd.f32 %v797_v44, %v663_v18 }
 0x186   :  { %v802_v50 = vpop.f32.mrf.mxu0 }
 0x187   :  { %v803_v21 = vadd.f32 %v802_v50, %v670_v33 }
 0x188   :  { %v804_v11 = vpop.f32.mrf.mxu0 }
 0x189   :  { %v805_v6 = vadd.f32 %v804_v11, %v672_v26 }
 0x18b   :  { %v892_v27 = vpop.f32.mrf.mxu1 }
 0x18c   :  { %v893_v55 = vadd.f32 %v892_v27, %v796_v4 }
 0x18d   :  { %v894_v61 = vpop.f32.mrf.mxu1 }
 0x18e   :  { %v904_v12 = vmax.f32 %v893_v55, 0.0  ;;  %v895_v19 = vadd.f32 %v894_v61, %v798_v60 }
 0x18f   :  { %v899_v32 = vpop.f32.mrf.mxu1 }
 0x190   :  { %908 = vst [vmem:[%s1565_s3] sm:$0xff] %v904_v12  ;;  %v905_v58 = vmax.f32 %v895_v19, 0.0  ;;  %v900_v20 = vadd.f32 %v899_v32, %v803_v21 }
 0x191   :  { %v901_v56 = vpop.f32.mrf.mxu1 }
 0x192   :  { %909 = vst [vmem:[%s1565_s3 + $0x8] sm:$0xff] %v905_v58  ;;  %v906_v8 = vmax.f32 %v900_v20, 0.0  ;;  %v902_v7 = vadd.f32 %v901_v56, %v805_v6  ;;  %v912_v36 = vadd.f32 %v905_v58, %v904_v12 }
 0x194   :  { %910 = vst [vmem:[%s1565_s3 + $0x10] sm:$0xff] %v906_v8  ;;  %v907_v30 = vmax.f32 %v902_v7, 0.0  ;;  %913 = vadd.xlane.f32.xlu1 %v912_v36 }
 0x196   :  { %911 = vst [vmem:[%s1565_s3 + $0x18] sm:$0xff] %v907_v30  ;;  %v915_v41 = vadd.f32 %v907_v30, %v906_v8 }
 0x198   :  { %916 = vadd.xlane.f32.xlu0 %v915_v41 }
 0x21d   :  { %v914_v62 = vpop.xlane.xlu1 %913 }
 0x21e   :  { %v918_v0 = vmul.f32 0.00390625, %v914_v62 }
 0x220   :  { %921 = vst.msk [vmem:[%s1566_s4] sm:$0xff] %vm920_vm4, %v918_v0 }
 0x221   :  { %v917_v63 = vpop.xlane.xlu0 %916 }
 0x222   :  { %v919_v1 = vmul.f32 0.00390625, %v917_v63 }
 0x224   :  { %922 = vst.msk [vmem:[%s1566_s4 + $0x8] sm:$0xff] %vm920_vm4, %v919_v1 }

</bundles_post_ra>
